<compile_context>
chip_gen: v7x
topology: tpu7x:2x2x1
jax: 0.10.0
libtpu: 0.0.40
codegen_flags: <defaults>
</compile_context>

<pallas_src>
import functools
import math

import jax
import jax.numpy as jnp
from jax.experimental import pallas as pl
from jax.experimental.pallas import tpu as pltpu


def _round_up(x, m):
    return ((x + m - 1) // m) * m


def _sublane_pack(dtype):
    # rows per packed vreg sublane group: 8 for 32-bit, 16 for 16-bit, 32 for 8-bit.
    itemsize = jnp.dtype(dtype).itemsize
    return (4 // itemsize) * 8


def _tpu_generation_params():
    """VMEM limit / grid-step policy per TPU generation (trace-time query)."""
    try:
        vmem_cap = int(pltpu.get_tpu_info().vmem_capacity_bytes)
    except Exception:
        vmem_cap = 0
    if vmem_cap and vmem_cap <= 64 * 1024 * 1024:
        # v7x-class: 64 MiB VMEM per TC, 2 TensorCores share the "parallel" axis.
        vmem_limit = 44 * 1024 * 1024
        min_steps = 4
    elif vmem_cap:
        # v5e / v6e: 128 MiB physical VMEM, single TensorCore.
        vmem_limit = 64 * 1024 * 1024
        min_steps = 2
    else:
        # Unknown backend (e.g. interpret mode): conservative, safe everywhere.
        vmem_limit = 32 * 1024 * 1024
        min_steps = 2
    return {
        "vmem_limit": vmem_limit,
        "budget": vmem_limit - 8 * 1024 * 1024,   # headroom for internal scratch
        "min_steps": min_steps,
    }


def _pick_tile_rows(rows, d, dtype, need_alpha, budget_bytes, min_steps):
    """Largest safe tile_rows for a (rows, d) problem given a VMEM budget."""
    pack = _sublane_pack(dtype)
    isize = jnp.dtype(dtype).itemsize
    # Per-row bytes of the double-buffered I/O streams (lane-padded).
    io_row = _round_up(d, 128) * isize + _round_up(d + 1, 128) * isize
    if need_alpha:
        io_row += 128 * 4                       # f32 alpha column output
    # Per-row bytes of single-buffered in-kernel f32 temporaries
    # (f32 upcast of h + exp(h - m) intermediate).
    tmp_row = 2 * _round_up(d, 128) * 4
    per_row = 2 * io_row + tmp_row

    t = max(pack, (budget_bytes // per_row) // pack * pack)   # fits budget, pack-aligned
    t = min(t, 2048)                                          # diminishing returns past ~512-2048
    rows_p = _round_up(rows, pack)
    t = min(t, rows_p)                                        # never bigger than the problem

    # Keep >= min_steps grid steps when the problem is big enough (pipeline
    # overlap; >= 2 per TC on v7x), but never shrink a tile below ~1 MiB of
    # I/O where per-step overhead (~0.35 us) would dominate.
    if rows_p >= min_steps * pack:
        floor_t = max(pack, _round_up(pl.cdiv(1 << 20, io_row), pack))
        cap = max(floor_t, _round_up(pl.cdiv(rows_p, min_steps), pack))
        t = min(t, cap)
    return int(max(t, pack))


def _inv_log_softmax_kernel(la_ref, h_ref, out_ref, *alpha_refs):
    # la_ref     : (1,) f32 in SMEM   -- the log_alpha scalar
    # h_ref      : (TR, D)            -- tile of input rows
    # out_ref    : (TR, D+1)          -- fused logits tile (augmented feature dim)
    # alpha_refs : optional ((TR, 1) f32,) -- alpha-column logit (logdetjac fusion)
    h = h_ref[...].astype(jnp.float32)                        # (TR, D)
    la = la_ref[0]                                            # scalar f32
    d = h.shape[-1]

    # Numerically-stable log-softmax over the (D+1)-wide augmented row [h, log_alpha].
    row_max = jnp.max(h, axis=-1, keepdims=True)              # (TR, 1)
    m = jnp.maximum(row_max, la)                              # (TR, 1)
    sum_exp = jnp.sum(jnp.exp(h - m), axis=-1, keepdims=True) + jnp.exp(la - m)
    logz = m + jnp.log(sum_exp)                               # (TR, 1)
    alpha_logit = la - logz                                   # (TR, 1) f32

    out_ref[:, :d] = (h - logz).astype(out_ref.dtype)         # logits for the h part
    out_ref[:, d:] = alpha_logit.astype(out_ref.dtype)        # logits for the alpha slot
    if alpha_refs:
        alpha_refs[0][...] = alpha_logit                      # f32 column for logdetjac


@functools.partial(jax.jit, static_argnames=("tile_rows", "need_alpha", "vmem_limit"))
def _fwd_pallas(h2, log_alpha, tile_rows, need_alpha, vmem_limit):
    """Pallas forward on a (rows, D) slab.

    Returns logits (rows, D+1) and, if need_alpha, the f32 alpha column (rows, 1).
    Ragged row counts are handled by Pallas boundary-block masking (no pad/slice).
    """
    rows, d = h2.shape
    grid = (pl.cdiv(rows, tile_rows),)

    out_shape = [jax.ShapeDtypeStruct((rows, d + 1), h2.dtype)]
    out_specs = [pl.BlockSpec((tile_rows, d + 1), lambda i: (i, 0))]
    if need_alpha:
        out_shape.append(jax.ShapeDtypeStruct((rows, 1), jnp.float32))
        out_specs.append(pl.BlockSpec((tile_rows, 1), lambda i: (i, 0)))

    outs = pl.pallas_call(
        _inv_log_softmax_kernel,
        out_shape=tuple(out_shape),
        grid_spec=pltpu.PrefetchScalarGridSpec(
            num_scalar_prefetch=0,
            grid=grid,
            in_specs=[
                pl.BlockSpec(memory_space=pltpu.MemorySpace.SMEM),   # log_alpha scalar
                pl.BlockSpec((tile_rows, d), lambda i: (i, 0)),      # h tile
            ],
            out_specs=out_specs,
        ),
        compiler_params=pltpu.CompilerParams(
            dimension_semantics=("parallel",),
            vmem_limit_bytes=vmem_limit,
        ),
    )(log_alpha.astype(jnp.float32), h2)

    if need_alpha:
        return outs[0], outs[1]
    return outs[0]


def invertible_log_softmax(h, log_alpha, input_mask=None, logp=None, *,
                           tile_rows=None, use_pallas=None):
    """Full forward matching the PyTorch module (glue around the Pallas kernel)."""
    orig_shape = h.shape
    d = orig_shape[-1]
    lead = orig_shape[:-1]
    rows = math.prod(lead) if lead else 1
    need_alpha = logp is not None
    itemsize = jnp.dtype(h.dtype).itemsize

    if use_pallas is None:
        # Bytes-based dispatch: Pallas only pays off for lane-dense (D >= 128)
        # slabs with >= ~1 MiB of input traffic; otherwise XLA fuses it better.
        use_pallas = (d >= 128) and (rows * _round_up(d, 128) * itemsize >= (1 << 20))

    alpha = None
    if use_pallas:
        gen = _tpu_generation_params()
        if tile_rows is None:
            tile_rows = _pick_tile_rows(rows, d, h.dtype, need_alpha,
                                        gen["budget"], gen["min_steps"])
        h2 = h.reshape(rows, d)
        if need_alpha:
            logits2, alpha2 = _fwd_pallas(h2, log_alpha, tile_rows, True,
                                          gen["vmem_limit"])
            alpha = alpha2.reshape(*lead, 1)                   # f32, from the kernel
        else:
            logits2 = _fwd_pallas(h2, log_alpha, tile_rows, False,
                                  gen["vmem_limit"])
        logits = logits2.reshape(*lead, d + 1)
    else:
        la = jnp.broadcast_to(log_alpha.astype(h.dtype), (*lead, 1))
        hp1 = jnp.concatenate([h, la], axis=-1)
        logits = jax.nn.log_softmax(hp1, axis=-1)
        if need_alpha:
            alpha = logits[..., -1:].astype(jnp.float32)

    if logp is None:
        return logits

    # _logdetjac: sum of the alpha-column logit over all non-batch dims.
    logdiff = alpha[..., 0]
    if input_mask is not None:
        logdiff = logdiff * jnp.all(input_mask, axis=-1).astype(logdiff.dtype)
    logdetjac = logdiff.reshape(logits.shape[0], -1).sum(axis=1, keepdims=True)
    return logits, logp - logdetjac.astype(logp.dtype)


def _ref_logits_f32(h, log_alpha):
    la = jnp.broadcast_to(log_alpha.astype(jnp.float32), (*h.shape[:-1], 1))
    hp1 = jnp.concatenate([h.astype(jnp.float32), la], axis=-1)
    return jax.nn.log_softmax(hp1, axis=-1)


if __name__ == "__main__":
    key = jax.random.PRNGKey(0)
    k1, k2, k3, k4, k5 = jax.random.split(key, 5)
    log_alpha = jnp.zeros((1,), dtype=jnp.float32)   # buffer init as in __init__

    # --- Test 1: small f32 shape, force the Pallas path, logp=None and logp paths ---
    B, S, D = 2, 8, 32
    h1 = jax.random.normal(k1, (B, S, D), dtype=jnp.float32)
    logits1 = invertible_log_softmax(h1, log_alpha, use_pallas=True)
    logits1 = jax.block_until_ready(logits1)
    ref1 = _ref_logits_f32(h1, log_alpha)
    assert logits1.shape == (B, S, D + 1)
    assert jnp.allclose(logits1, ref1, atol=1e-5, rtol=1e-5)

    logp_in = jax.random.normal(k2, (B, 1), dtype=jnp.float32)
    logits1b, logp_out1 = invertible_log_softmax(h1, log_alpha, logp=logp_in, use_pallas=True)
    logits1b, logp_out1 = jax.block_until_ready((logits1b, logp_out1))
    ref_ldj1 = ref1[..., -1].reshape(B, -1).sum(axis=1, keepdims=True)
    assert jnp.allclose(logp_out1, logp_in - ref_ldj1, atol=1e-4, rtol=1e-5)

    # --- Test 2: ragged grid (400 rows, forced tile_rows=64 -> partial last block),
    #             f32, with input_mask + logp ---
    B2, S2, D2 = 2, 200, 96
    h2 = jax.random.normal(k3, (B2, S2, D2), dtype=jnp.float32)
    mask2 = jax.random.normal(k4, (B2, S2, D2)) > -0.5
    logp2_in = jax.random.normal(k5, (B2, 1), dtype=jnp.float32)
    logits2, logp_out2 = invertible_log_softmax(
        h2, log_alpha, input_mask=mask2, logp=logp2_in, use_pallas=True, tile_rows=64)
    logits2, logp_out2 = jax.block_until_ready((logits2, logp_out2))
    ref2 = _ref_logits_f32(h2, log_alpha)
    assert jnp.allclose(logits2, ref2, atol=1e-5, rtol=1e-5)
    ref_logdiff2 = ref2[..., -1] * jnp.all(mask2, axis=-1).astype(jnp.float32)
    ref_ldj2 = ref_logdiff2.reshape(B2, -1).sum(axis=1, keepdims=True)
    assert jnp.allclose(logp_out2, logp2_in - ref_ldj2, atol=1e-2, rtol=1e-5)

    # --- Test 3: bf16 input (16-row sublane pack), lane-dense D=128 ---
    B3, S3, D3 = 4, 64, 128
    h3 = jax.random.normal(k1, (B3, S3, D3), dtype=jnp.float32).astype(jnp.bfloat16)
    logits3 = invertible_log_softmax(h3, log_alpha, use_pallas=True)
    logits3 = jax.block_until_ready(logits3)
    ref3 = _ref_logits_f32(h3.astype(jnp.float32), log_alpha).astype(jnp.bfloat16)
    assert logits3.dtype == jnp.bfloat16 and logits3.shape == (B3, S3, D3 + 1)
    assert jnp.allclose(logits3.astype(jnp.float32), ref3.astype(jnp.float32), atol=1e-1)

    # --- Test 4: auto-dispatch sends tiny / narrow-D shapes to fused XLA ---
    logits4 = invertible_log_softmax(h1, log_alpha)          # D=32 < 128 -> XLA path
    logits4 = jax.block_until_ready(logits4)
    assert jnp.allclose(logits4, ref1, atol=1e-5, rtol=1e-5)

    # --- Test 5: auto-dispatch picks Pallas for a lane-dense >= 1 MiB slab ---
    B5, S5, D5 = 4, 512, 128
    h5 = jax.random.normal(k2, (B5, S5, D5), dtype=jnp.float32)
    logits5 = invertible_log_softmax(h5, log_alpha)          # auto: Pallas path
    logits5 = jax.block_until_ready(logits5)
    ref5 = _ref_logits_f32(h5, log_alpha)
    assert jnp.allclose(logits5, ref5, atol=1e-5, rtol=1e-5)

    print("KERNEL_OK")
</pallas_src>

<mosaic_0001>
module attributes {stable_mosaic.version = 11 : i64} {
  func.func @_inv_log_softmax_kernel(%arg0: i32, %arg1: memref<1xf32, #tpu.memory_space<smem>>, %arg2: memref<16x32xf32, #tpu.memory_space<vmem>>, %arg3: memref<16x33xf32, #tpu.memory_space<vmem>>) attributes {dimension_semantics = [#tpu.dimension_semantics<parallel>], iteration_bounds = array<i64: 1>, scalar_prefetch = 0 : i64, scratch_operands = 0 : i64, tpu.core_type = #tpu.core_type<tc>, window_params = [{transform_indices = @transform_0, window_bounds = array<i64: 1>}, {transform_indices = @transform_1, window_bounds = array<i64: 16, 32>}, {transform_indices = @transform_2, window_bounds = array<i64: 16, 33>}]} {
    %c0 = arith.constant 0 : index
    %c0_0 = arith.constant 0 : index
    %0 = vector.load %arg2[%c0, %c0_0] : memref<16x32xf32, #tpu.memory_space<vmem>>, vector<16x32xf32>
    %c0_1 = arith.constant 0 : index
    %1 = memref.load %arg1[%c0_1] : memref<1xf32, #tpu.memory_space<smem>>
    %cst = arith.constant dense<0xFF800000> : vector<16xf32>
    %2 = vector.multi_reduction <maximumf>, %0, %cst [1] : vector<16x32xf32> to vector<16xf32>
    %3 = vector.shape_cast %2 : vector<16xf32> to vector<16x1xf32>
    %4 = vector.broadcast %1 : f32 to vector<16x1xf32>
    %5 = arith.maximumf %3, %4 : vector<16x1xf32>
    %6 = vector.broadcast %5 : vector<16x1xf32> to vector<16x32xf32>
    %7 = arith.subf %0, %6 : vector<16x32xf32>
    %8 = math.exp %7 : vector<16x32xf32>
    %cst_2 = arith.constant dense<0.000000e+00> : vector<16xf32>
    %9 = vector.multi_reduction <add>, %8, %cst_2 [1] : vector<16x32xf32> to vector<16xf32>
    %10 = vector.shape_cast %9 : vector<16xf32> to vector<16x1xf32>
    %11 = vector.broadcast %1 : f32 to vector<16x1xf32>
    %12 = arith.subf %11, %5 : vector<16x1xf32>
    %13 = math.exp %12 : vector<16x1xf32>
    %14 = arith.addf %10, %13 : vector<16x1xf32>
    %15 = math.log %14 : vector<16x1xf32>
    %16 = arith.addf %5, %15 : vector<16x1xf32>
    %17 = vector.broadcast %1 : f32 to vector<16x1xf32>
    %18 = arith.subf %17, %16 : vector<16x1xf32>
    %19 = vector.broadcast %16 : vector<16x1xf32> to vector<16x32xf32>
    %20 = arith.subf %0, %19 : vector<16x32xf32>
    %c0_3 = arith.constant 0 : index
    %c0_4 = arith.constant 0 : index
    %21 = vector.load %arg3[%c0_3, %c0_4] : memref<16x33xf32, #tpu.memory_space<vmem>>, vector<16x32xf32>
    tpu.vector_store %arg3[%c0_3, %c0_4], %20 {strides = array<i32>} : memref<16x33xf32, #tpu.memory_space<vmem>>, vector<16x32xf32>,
    %c0_5 = arith.constant 0 : index
    %c32 = arith.constant 32 : index
    %22 = vector.load %arg3[%c0_5, %c32] : memref<16x33xf32, #tpu.memory_space<vmem>>, vector<16x1xf32>
    tpu.vector_store %arg3[%c0_5, %c32], %18 {strides = array<i32>} : memref<16x33xf32, #tpu.memory_space<vmem>>, vector<16x1xf32>,
    return
  }
  func.func @transform_0(%arg0: i32) -> i32 {
    %c0_i32 = arith.constant 0 : i32
    %c0_i32_0 = arith.constant 0 : i32
    return %c0_i32 : i32
  }
  func.func @transform_1(%arg0: i32) -> (i32, i32) {
    %c0_i32 = arith.constant 0 : i32
    %c0_i32_0 = arith.constant 0 : i32
    return %arg0, %c0_i32 : i32, i32
  }
  func.func @transform_2(%arg0: i32) -> (i32, i32) {
    %c0_i32 = arith.constant 0 : i32
    %c0_i32_0 = arith.constant 0 : i32
    return %arg0, %c0_i32 : i32, i32
  }
}

</mosaic_0001>

<bundles_post_ra>
// kernel: _fwd_pallas.1
= control target key start
LH: loop header
LB: loop body
LE: loop exit
PB: predicated region body
PF: predicated region fallthrough
CT: control target
= control target key end

     0   :  { %8 = vsyncpa [#allocation4], 0  ;;  %s214_s0 = inlined_call_operand.<no memory space> [shape: f32[1], index: 0, kind: input, shape index: {}]   ;;  %s215_s1 = inlined_call_operand.hbm [shape: f32[16,32], index: 1, kind: input, shape index: {}]   ;;  %s216_s2 = inlined_call_operand.hbm [shape: f32[16,33], index: 2, kind: output, shape index: {}]  }
   0x1   :  { %9 = vsyncpa [#allocation5], 0  ;;  %s156_s9 = smov [#allocation3]   ;;  %s108_s13 = scalar_lea.hbm %s215_s1, 256 }
   0x2   :  { %s17_s10 = sshll.u32 %s156_s9, 4  ;;  %p109_p0 = scmp.ne.s32.totalorder %s215_s1, %s108_s13  ;;  %s18_s10 = int_to_ptr.vmem [resolvable:$true] %s17_s10 }
   0x3   :  { %p112_p1 = scmp.lt.u32.totalorder %s108_s13, %s215_s1 }
   0x5   :  { %p114_p2 = pnand %p112_p1, %p109_p0 }
   0x7   :  { %117 = shalt.err (!%p114_p2)
}
   0x8   :  { %s118_s18 = scalar_lea.vmem %s18_s10, 256  ;;  %p123_p4 = scmp.lt.s32.totalorder %s18_s10, %s18_s10 }
   0x9   :  { %p119_p3 = scmp.ne.s32.totalorder %s18_s10, %s118_s18  ;;  %p124_p5 = scmp.lt.s32.totalorder %s118_s18, %s118_s18 }
   0xb   :  { %p125_p6 = por %p124_p5, %p123_p4 }
   0xd   :  { %p126_p7 = pnand %p125_p6, %p119_p3 }
   0xf   :  { %129 = shalt.err (!%p126_p7)
}
  0x10   :  { %s157_s19 = smov 128   ;;  %s158_s20 = smov 8  }
  0x11   :  { %23 = dma.hbm_to_vmem [thread:$0]  %s215_s1, 256, %s18_s10, [#allocation4], %s157_s19, %s157_s19, %s158_s20  }
  0x12   :  { %152 = dma.done.wait [#allocation4], 256  }
  0x13   :  { %153 = vsyncadd [#allocation4], 4294967040  ;;  %vm30_vm0 = vcmask 261120   ;;  %v27_v0 = vld [vmem:[#allocation3] sm:$0xff]  ;;  %v28_v1 = vld [vmem:[#allocation3 + $0x8] sm:$0xff]  ;;  %v37_v4 = vstv %s214_s0  ;;  %vm72_vm1 = vcmask 269568  }
  0x14   :  { %v31_v2 = vsel %vm30_vm0, %v27_v0, -inf  ;;  %v34_v3 = vsel %vm30_vm0, %v28_v1, -inf  ;;  %s159_s0 = smov [#allocation6]  }
  0x15   :  { %32 = vmax.xlane.f32.xlu0 %v31_v2  ;;  %s80_s1 = sshll.u32 %s159_s0, 4  ;;  %s81_s1 = int_to_ptr.vmem [resolvable:$true] %s80_s1 }
  0x16   :  { %s130_s25 = scalar_lea.vmem %s81_s1, 256  ;;  %p135_p9 = scmp.lt.s32.totalorder %s81_s1, %s81_s1 }
  0x17   :  { %p131_p8 = scmp.ne.s32.totalorder %s81_s1, %s130_s25  ;;  %p136_p10 = scmp.lt.s32.totalorder %s130_s25, %s130_s25 }
  0x19   :  { %35 = vmax.xlane.f32.xlu0 %v34_v3  ;;  %p137_p11 = por %p136_p10, %p135_p9 }
  0x1b   :  { %p138_p12 = pnand %p137_p11, %p131_p8 }
  0xa2   :  { %v33_v5 = vpop.xlane.xlu0 %32 }
  0xa3   :  { %v38_v6 = vmax.f32 %v33_v5, %v37_v4 }
  0xa5   :  { %v40_v7 = vsub.f32 %v27_v0, %v38_v6  ;;  %v52_v17 = vsub.f32 %v37_v4, %v38_v6 }
  0xa6   :  { %v36_v8 = vpop.xlane.xlu0 %35 }
  0xa7   :  { %v42_v9 = vmul.f32 1.442695, %v40_v7  ;;  %v39_v10 = vmax.f32 %v36_v8, %v37_v4  ;;  %v54_v18 = vmul.f32 1.442695, %v52_v17 }
  0xa9   :  { %96 = vpow2.f32 %v42_v9  ;;  %v41_v11 = vsub.f32 %v28_v1, %v39_v10  ;;  %v53_v19 = vsub.f32 %v37_v4, %v39_v10 }
  0xab   :  { %v44_v12 = vmul.f32 1.442695, %v41_v11  ;;  %v56_v20 = vmul.f32 1.442695, %v53_v19 }
  0xad   :  { %98 = vpow2.f32 %v44_v12 }
  0xae   :  { %100 = vpow2.f32 %v54_v18 }
  0xaf   :  { %102 = vpow2.f32 %v56_v20 }
  0xb3   :  { %v97_v13 = vpop.eup %96 }
  0xb4   :  { %v46_v14 = vsel %vm30_vm0, %v97_v13, 0.0 }
  0xb5   :  { %47 = vadd.xlane.f32.xlu1 %v46_v14 }
  0xb7   :  { %v99_v15 = vpop.eup %98 }
  0xb8   :  { %v49_v16 = vsel %vm30_vm0, %v99_v15, 0.0  ;;  %v101_v21 = vpop.eup %100 }
  0xb9   :  { %50 = vadd.xlane.f32.xlu1 %v49_v16  ;;  %v103_v24 = vpop.eup %102 }
 0x142   :  { %v48_v22 = vpop.xlane.xlu1 %47 }
 0x143   :  { %v58_v23 = vadd.f32 %v101_v21, %v48_v22 }
 0x145   :  { %104 = vlog2.f32 %v58_v23 }
 0x146   :  { %v51_v25 = vpop.xlane.xlu1 %50 }
 0x147   :  { %v59_v26 = vadd.f32 %v103_v24, %v51_v25 }
 0x149   :  { %106 = vlog2.f32 %v59_v26 }
 0x14f   :  { %v105_v27 = vpop.eup %104 }
 0x150   :  { %v61_v28 = vmul.f32 0.6931472, %v105_v27 }
 0x152   :  { %v64_v29 = vadd.f32 %v61_v28, %v38_v6 }
 0x153   :  { %v107_v30 = vpop.eup %106 }
 0x154   :  { %v66_v31 = vsub.f32 %v37_v4, %v64_v29  ;;  %v68_v32 = vsub.f32 %v27_v0, %v64_v29  ;;  %v63_v33 = vmul.f32 0.6931472, %v107_v30 }
 0x156   :  { %70 = vst.msk [vmem:[#allocation6] sm:$0xff] %vm30_vm0, %v68_v32  ;;  %v65_v34 = vadd.f32 %v63_v33, %v39_v10 }
 0x157   :  { %73 = vst.msk [vmem:[#allocation6] sm:$0xff] %vm72_vm1, %v66_v31 }
 0x158   :  { %v67_v35 = vsub.f32 %v37_v4, %v65_v34  ;;  %v69_v36 = vsub.f32 %v28_v1, %v65_v34 }
 0x15a   :  { %71 = vst.msk [vmem:[#allocation6 + $0x8] sm:$0xff] %vm30_vm0, %v69_v36 }
 0x15b   :  { %74 = vst.msk [vmem:[#allocation6 + $0x8] sm:$0xff] %vm72_vm1, %v67_v35 }
 0x15c   :  { %141 = shalt.err (!%p138_p12)
}
 0x15d   :  { %s142_s28 = scalar_lea.hbm %s216_s2, 256 }
 0x15e   :  { %p143_p13 = scmp.ne.s32.totalorder %s216_s2, %s142_s28  ;;  %p146_p0 = scmp.lt.u32.totalorder %s142_s28, %s216_s2 }
 0x160   :  { %p148_p1 = pnand %p146_p0, %p143_p13 }
 0x162   :  { %151 = shalt.err (!%p148_p1)
}
 0x163   :  { %86 = dma.vmem_to_hbm [thread:$0]  %s81_s1, 256, %s216_s2, [#allocation5], %s157_s19, %s157_s19, %s158_s20  }
 0x164   :  { %154 = dma.done.wait [#allocation5], 256  }
 0x165   :  { %155 = vsyncadd [#allocation5], 4294967040 }
 0x166   :  { %90 = vsyncpa [#allocation4], 1 }
 0x167   :  { %91 = vsyncpa [#allocation5], 1 }

</bundles_post_ra>
